<compile_context>
chip_gen: v7x
topology: tpu7x:2x2x1
jax: 0.10.0
libtpu: 0.0.40
codegen_flags: <defaults>
</compile_context>

<pallas_src>
import functools

import jax
import jax.numpy as jnp
from jax.experimental import pallas as pl
from jax.experimental.pallas import tpu as pltpu


def _ce_kernel(logits_ref, labels_ref, loss_ref, cnt_ref,
               acc_loss, acc_cnt, *,
               ignore_id, num_classes, hw, tile, n_t_half, ragged):
    t = pl.program_id(2)

    @pl.when(t == 0)
    def _():
        acc_loss[...] = jnp.zeros_like(acc_loss)
        acc_cnt[...] = jnp.zeros_like(acc_cnt)

    x = logits_ref[...].astype(jnp.float32)          # (1, C, T)
    lab = labels_ref[...].astype(jnp.int32)          # (1, 1, T)

    # validity mask: not the ignored class; ragged-tail check only compiled in
    # when hw % tile != 0 (Python-time constant -> zero cost in the clean case)
    valid = lab != ignore_id                         # (1, 1, T)
    if ragged:
        p = pl.program_id(1)
        pix = ((p * n_t_half + t) * tile
               + jax.lax.broadcasted_iota(jnp.int32, lab.shape, 2))
        valid = jnp.logical_and(valid, pix < hw)

    # numerically stable log-sum-exp over the class (sublane) axis
    # (optional v7x micro-opt if EUP-bound: compute exp on (x - m) in bf16)
    m = jnp.max(x, axis=1, keepdims=True)            # (1, 1, T)
    lse = m + jnp.log(jnp.sum(jnp.exp(x - m), axis=1, keepdims=True))

    # target-class logit via C static row selects (C is tiny; pure VPU,
    # no (C,T) iota / compare / extra sublane reduction)
    tgt = jnp.zeros_like(lse)
    for k in range(num_classes):
        tgt = tgt + jnp.where(lab == k, x[:, k:k + 1, :], 0.0)

    # masked per-pixel loss; jnp.where keeps tail/ignored-lane garbage out
    loss_vals = jnp.where(valid, lse - tgt, 0.0)     # (1, 1, T)

    # single cross-lane reduce per tile into scalar VMEM accumulators
    acc_loss[...] += jnp.sum(loss_vals, axis=-1, keepdims=True)
    acc_cnt[...] += jnp.sum(valid.astype(jnp.float32), axis=-1, keepdims=True)

    @pl.when(t == pl.num_programs(2) - 1)
    def _():
        loss_ref[...] = acc_loss[...]
        cnt_ref[...] = acc_cnt[...]


def cross_entropy_loss(logits_nchw, labels_nhw, *, ignore_id=0):
    """Mean cross-entropy over non-ignored pixels (F.cross_entropy semantics).

    Note: ignore_id defaults to 0 here (matching the module config), not
    PyTorch's F.cross_entropy default of -100 — class 0 is dropped by default.
    """
    n, c, h, w = logits_nchw.shape
    hw = h * w

    # metadata-only reshapes: NCHW -> (N, C, HW), labels -> (N, 1, HW)
    x = logits_nchw.reshape(n, c, hw)
    lab = labels_nhw.reshape(n, 1, hw)
    if (not jnp.issubdtype(lab.dtype, jnp.integer)) or lab.dtype.itemsize > 4:
        lab = lab.astype(jnp.int32)   # narrow int dtypes pass through untouched

    # ---- generation-aware VMEM budget and lane-tile sizing ----------------
    try:
        info = pltpu.get_tpu_info()
        vmem_cap = int(getattr(info, "vmem_capacity_bytes", 128 * 1024 * 1024))
    except Exception:                 # pragma: no cover - conservative fallback
        vmem_cap = 128 * 1024 * 1024
    # ~half of physical VMEM: 64 MiB on v5e/v6e (128 MiB), 32 MiB on v7x (64 MiB)
    vmem_limit = min(64 * 1024 * 1024, max(32 * 1024 * 1024, vmem_cap // 2))

    # double-buffered logits (f32) + labels per pixel, within ~3/4 of the limit
    budget = (3 * vmem_limit) // 4
    per_pix = 2 * (c * 4 + lab.dtype.itemsize)
    cap = max(128, min(512 * 1024, (budget // per_pix) // 128 * 128))

    if hw <= cap:
        tile, n_t = hw, 1
    else:
        tile, n_t = cap, pl.cdiv(hw, cap)

    # 2-way "parallel" split of the HW tiles (keeps both v7x TCs busy even at
    # N=1). Only taken when the tile count splits evenly so no grid step maps
    # to a fully out-of-range block.
    n_split = 2 if (n_t >= 2 and n_t % 2 == 0) else 1
    n_t_half = n_t // n_split
    ragged = (hw % tile) != 0

    kernel = functools.partial(
        _ce_kernel, ignore_id=ignore_id, num_classes=c, hw=hw,
        tile=tile, n_t_half=n_t_half, ragged=ragged)

    loss_parts, cnt_parts = pl.pallas_call(
        kernel,
        out_shape=(jax.ShapeDtypeStruct((n * n_split, 1, 1), jnp.float32),
                   jax.ShapeDtypeStruct((n * n_split, 1, 1), jnp.float32)),
        grid_spec=pltpu.PrefetchScalarGridSpec(
            num_scalar_prefetch=0,
            grid=(n, n_split, n_t_half),
            in_specs=[
                pl.BlockSpec((1, c, tile),
                             lambda b, p, t: (b, 0, p * n_t_half + t)),
                pl.BlockSpec((1, 1, tile),
                             lambda b, p, t: (b, 0, p * n_t_half + t)),
            ],
            out_specs=[
                pl.BlockSpec((1, 1, 1), lambda b, p, t: (b * n_split + p, 0, 0)),
                pl.BlockSpec((1, 1, 1), lambda b, p, t: (b * n_split + p, 0, 0)),
            ],
            scratch_shapes=[pltpu.VMEM((1, 1, 1), jnp.float32),
                            pltpu.VMEM((1, 1, 1), jnp.float32)],
        ),
        compiler_params=pltpu.CompilerParams(
            dimension_semantics=("parallel", "parallel", "arbitrary"),
            vmem_limit_bytes=vmem_limit),
    )(x, lab)

    # mean over valid pixels; 0/0 -> nan, matching PyTorch when all ignored
    return jnp.sum(loss_parts) / jnp.sum(cnt_parts)


def _reference_ce(logits_nchw, labels_nhw, ignore_id=0):
    n, c, h, w = logits_nchw.shape
    x = jnp.transpose(logits_nchw, (0, 2, 3, 1)).reshape(-1, c).astype(jnp.float32)
    lab = labels_nhw.reshape(-1).astype(jnp.int32)
    lse = jax.nn.logsumexp(x, axis=-1)
    tgt = jnp.take_along_axis(x, lab[:, None], axis=-1)[:, 0]
    valid = (lab != ignore_id).astype(jnp.float32)
    return jnp.sum((lse - tgt) * valid) / jnp.sum(valid)


if __name__ == "__main__":
    # Module config: CrossEntropyLoss(num_classes=4, ignore_id=0)
    num_classes = 4
    ignore_id = 0
    batch, spatial = 2, 16

    key = jax.random.PRNGKey(0)
    k_logits, k_labels = jax.random.split(key)
    logits = jax.random.normal(
        k_logits, (batch, num_classes, spatial, spatial), dtype=jnp.float32)
    labels = jax.random.randint(
        k_labels, (batch, spatial, spatial), 0, num_classes, dtype=jnp.int32)

    loss = cross_entropy_loss(logits, labels, ignore_id=ignore_id)
    loss = jax.block_until_ready(loss)

    ref = _reference_ce(logits, labels, ignore_id=ignore_id)
    assert jnp.allclose(loss, ref, rtol=1e-5, atol=1e-5), (loss, ref)

    # TODO(synk): the module's periodic host-side print of the loss value is a
    # training-loop side effect and is not reproduced here.
    print("KERNEL_OK")
</pallas_src>

<mosaic_0001>
module attributes {stable_mosaic.version = 11 : i64} {
  func.func @_ce_kernel(%arg0: i32, %arg1: i32, %arg2: i32, %arg3: memref<1x4x256xf32, #tpu.memory_space<vmem>>, %arg4: memref<1x1x256xi32, #tpu.memory_space<vmem>>, %arg5: memref<1x1x1xf32, #tpu.memory_space<vmem>>, %arg6: memref<1x1x1xf32, #tpu.memory_space<vmem>>, %arg7: memref<1x1x1xf32, #tpu.memory_space<vmem>>, %arg8: memref<1x1x1xf32, #tpu.memory_space<vmem>>) attributes {dimension_semantics = [#tpu.dimension_semantics<parallel>, #tpu.dimension_semantics<parallel>, #tpu.dimension_semantics<arbitrary>], iteration_bounds = array<i64: 2, 1, 1>, scalar_prefetch = 0 : i64, scratch_operands = 2 : i64, tpu.core_type = #tpu.core_type<tc>, window_params = [{transform_indices = @transform_0, window_bounds = array<i64: 1, 4, 256>}, {transform_indices = @transform_1, window_bounds = array<i64: 1, 1, 256>}, {transform_indices = @transform_2, window_bounds = array<i64: 1, 1, 1>}, {transform_indices = @transform_3, window_bounds = array<i64: 1, 1, 1>}]} {
    %c0_i32 = arith.constant 0 : i32
    %0 = arith.cmpi eq, %arg2, %c0_i32 : i32
    %1 = arith.extui %0 : i1 to i32
    %c0_i32_0 = arith.constant 0 : i32
    %2 = arith.cmpi ne, %1, %c0_i32_0 : i32
    scf.if %2 {
      %cst_31 = arith.constant 0.000000e+00 : f32
      %59 = vector.broadcast %cst_31 : f32 to vector<1x1x1xf32>
      %c0_32 = arith.constant 0 : index
      %c0_33 = arith.constant 0 : index
      %c0_34 = arith.constant 0 : index
      %60 = vector.load %arg7[%c0_32, %c0_33, %c0_34] : memref<1x1x1xf32, #tpu.memory_space<vmem>>, vector<1x1x1xf32>
      tpu.vector_store %arg7[%c0_32, %c0_33, %c0_34], %59 {strides = array<i32>} : memref<1x1x1xf32, #tpu.memory_space<vmem>>, vector<1x1x1xf32>,
      %cst_35 = arith.constant 0.000000e+00 : f32
      %61 = vector.broadcast %cst_35 : f32 to vector<1x1x1xf32>
      %c0_36 = arith.constant 0 : index
      %c0_37 = arith.constant 0 : index
      %c0_38 = arith.constant 0 : index
      %62 = vector.load %arg8[%c0_36, %c0_37, %c0_38] : memref<1x1x1xf32, #tpu.memory_space<vmem>>, vector<1x1x1xf32>
      tpu.vector_store %arg8[%c0_36, %c0_37, %c0_38], %61 {strides = array<i32>} : memref<1x1x1xf32, #tpu.memory_space<vmem>>, vector<1x1x1xf32>,
    } else {
    }
    %c0 = arith.constant 0 : index
    %c0_1 = arith.constant 0 : index
    %c0_2 = arith.constant 0 : index
    %3 = vector.load %arg3[%c0, %c0_1, %c0_2] : memref<1x4x256xf32, #tpu.memory_space<vmem>>, vector<1x4x256xf32>
    %c0_3 = arith.constant 0 : index
    %c0_4 = arith.constant 0 : index
    %c0_5 = arith.constant 0 : index
    %4 = vector.load %arg4[%c0_3, %c0_4, %c0_5] : memref<1x1x256xi32, #tpu.memory_space<vmem>>, vector<1x1x256xi32>
    %c0_i32_6 = arith.constant 0 : i32
    %5 = vector.broadcast %c0_i32_6 : i32 to vector<1x1x256xi32>
    %6 = arith.cmpi ne, %4, %5 : vector<1x1x256xi32>
    %cst = arith.constant dense<0xFF800000> : vector<1x256xf32>
    %7 = vector.multi_reduction <maximumf>, %3, %cst [1] : vector<1x4x256xf32> to vector<1x256xf32>
    %8 = vector.shape_cast %7 : vector<1x256xf32> to vector<1x1x256xf32>
    %9 = vector.broadcast %8 : vector<1x1x256xf32> to vector<1x4x256xf32>
    %10 = arith.subf %3, %9 : vector<1x4x256xf32>
    %11 = math.exp %10 : vector<1x4x256xf32>
    %cst_7 = arith.constant dense<0.000000e+00> : vector<1x256xf32>
    %12 = vector.multi_reduction <add>, %11, %cst_7 [1] : vector<1x4x256xf32> to vector<1x256xf32>
    %13 = vector.shape_cast %12 : vector<1x256xf32> to vector<1x1x256xf32>
    %14 = math.log %13 : vector<1x1x256xf32>
    %15 = arith.addf %8, %14 : vector<1x1x256xf32>
    %cst_8 = arith.constant 0.000000e+00 : f32
    %16 = vector.broadcast %cst_8 : f32 to vector<1x1x256xf32>
    %c0_i32_9 = arith.constant 0 : i32
    %17 = vector.broadcast %c0_i32_9 : i32 to vector<1x1x256xi32>
    %18 = arith.cmpi eq, %4, %17 : vector<1x1x256xi32>
    %19 = vector.extract_strided_slice %3 {offsets = [0, 0, 0], sizes = [1, 1, 256], strides = [1, 1, 1]} : vector<1x4x256xf32> to vector<1x1x256xf32>
    %cst_10 = arith.constant 0.000000e+00 : f32
    %20 = vector.broadcast %cst_10 : f32 to vector<1x1x256xf32>
    %21 = arith.select %18, %19, %20 : vector<1x1x256xi1>, vector<1x1x256xf32>
    %22 = arith.addf %16, %21 : vector<1x1x256xf32>
    %c1_i32 = arith.constant 1 : i32
    %23 = vector.broadcast %c1_i32 : i32 to vector<1x1x256xi32>
    %24 = arith.cmpi eq, %4, %23 : vector<1x1x256xi32>
    %25 = vector.extract_strided_slice %3 {offsets = [0, 1, 0], sizes = [1, 1, 256], strides = [1, 1, 1]} : vector<1x4x256xf32> to vector<1x1x256xf32>
    %cst_11 = arith.constant 0.000000e+00 : f32
    %26 = vector.broadcast %cst_11 : f32 to vector<1x1x256xf32>
    %27 = arith.select %24, %25, %26 : vector<1x1x256xi1>, vector<1x1x256xf32>
    %28 = arith.addf %22, %27 : vector<1x1x256xf32>
    %c2_i32 = arith.constant 2 : i32
    %29 = vector.broadcast %c2_i32 : i32 to vector<1x1x256xi32>
    %30 = arith.cmpi eq, %4, %29 : vector<1x1x256xi32>
    %31 = vector.extract_strided_slice %3 {offsets = [0, 2, 0], sizes = [1, 1, 256], strides = [1, 1, 1]} : vector<1x4x256xf32> to vector<1x1x256xf32>
    %cst_12 = arith.constant 0.000000e+00 : f32
    %32 = vector.broadcast %cst_12 : f32 to vector<1x1x256xf32>
    %33 = arith.select %30, %31, %32 : vector<1x1x256xi1>, vector<1x1x256xf32>
    %34 = arith.addf %28, %33 : vector<1x1x256xf32>
    %c3_i32 = arith.constant 3 : i32
    %35 = vector.broadcast %c3_i32 : i32 to vector<1x1x256xi32>
    %36 = arith.cmpi eq, %4, %35 : vector<1x1x256xi32>
    %37 = vector.extract_strided_slice %3 {offsets = [0, 3, 0], sizes = [1, 1, 256], strides = [1, 1, 1]} : vector<1x4x256xf32> to vector<1x1x256xf32>
    %cst_13 = arith.constant 0.000000e+00 : f32
    %38 = vector.broadcast %cst_13 : f32 to vector<1x1x256xf32>
    %39 = arith.select %36, %37, %38 : vector<1x1x256xi1>, vector<1x1x256xf32>
    %40 = arith.addf %34, %39 : vector<1x1x256xf32>
    %41 = arith.subf %15, %40 : vector<1x1x256xf32>
    %cst_14 = arith.constant 0.000000e+00 : f32
    %42 = vector.broadcast %cst_14 : f32 to vector<1x1x256xf32>
    %43 = arith.select %6, %41, %42 : vector<1x1x256xi1>, vector<1x1x256xf32>
    %c0_15 = arith.constant 0 : index
    %c0_16 = arith.constant 0 : index
    %c0_17 = arith.constant 0 : index
    %44 = vector.load %arg7[%c0_15, %c0_16, %c0_17] : memref<1x1x1xf32, #tpu.memory_space<vmem>>, vector<1x1x1xf32>
    %cst_18 = arith.constant dense<0.000000e+00> : vector<1x1xf32>
    %45 = vector.multi_reduction <add>, %43, %cst_18 [2] : vector<1x1x256xf32> to vector<1x1xf32>
    %46 = vector.shape_cast %45 : vector<1x1xf32> to vector<1x1x1xf32>
    %47 = arith.addf %44, %46 : vector<1x1x1xf32>
    %c0_19 = arith.constant 0 : index
    %c0_20 = arith.constant 0 : index
    %c0_21 = arith.constant 0 : index
    %48 = vector.load %arg7[%c0_19, %c0_20, %c0_21] : memref<1x1x1xf32, #tpu.memory_space<vmem>>, vector<1x1x1xf32>
    tpu.vector_store %arg7[%c0_19, %c0_20, %c0_21], %47 {strides = array<i32>} : memref<1x1x1xf32, #tpu.memory_space<vmem>>, vector<1x1x1xf32>,
    %c0_22 = arith.constant 0 : index
    %c0_23 = arith.constant 0 : index
    %c0_24 = arith.constant 0 : index
    %49 = vector.load %arg8[%c0_22, %c0_23, %c0_24] : memref<1x1x1xf32, #tpu.memory_space<vmem>>, vector<1x1x1xf32>
    %50 = arith.extui %6 : vector<1x1x256xi1> to vector<1x1x256xi32>
    %51 = arith.sitofp %50 : vector<1x1x256xi32> to vector<1x1x256xf32>
    %cst_25 = arith.constant dense<0.000000e+00> : vector<1x1xf32>
    %52 = vector.multi_reduction <add>, %51, %cst_25 [2] : vector<1x1x256xf32> to vector<1x1xf32>
    %53 = vector.shape_cast %52 : vector<1x1xf32> to vector<1x1x1xf32>
    %54 = arith.addf %49, %53 : vector<1x1x1xf32>
    %c0_26 = arith.constant 0 : index
    %c0_27 = arith.constant 0 : index
    %c0_28 = arith.constant 0 : index
    %55 = vector.load %arg8[%c0_26, %c0_27, %c0_28] : memref<1x1x1xf32, #tpu.memory_space<vmem>>, vector<1x1x1xf32>
    tpu.vector_store %arg8[%c0_26, %c0_27, %c0_28], %54 {strides = array<i32>} : memref<1x1x1xf32, #tpu.memory_space<vmem>>, vector<1x1x1xf32>,
    %c0_i32_29 = arith.constant 0 : i32
    %56 = arith.cmpi eq, %arg2, %c0_i32_29 : i32
    %57 = arith.extui %56 : i1 to i32
    %c0_i32_30 = arith.constant 0 : i32
    %58 = arith.cmpi ne, %57, %c0_i32_30 : i32
    scf.if %58 {
      %c0_31 = arith.constant 0 : index
      %c0_32 = arith.constant 0 : index
      %c0_33 = arith.constant 0 : index
      %59 = vector.load %arg7[%c0_31, %c0_32, %c0_33] : memref<1x1x1xf32, #tpu.memory_space<vmem>>, vector<1x1x1xf32>
      %c0_34 = arith.constant 0 : index
      %c0_35 = arith.constant 0 : index
      %c0_36 = arith.constant 0 : index
      %60 = vector.load %arg5[%c0_34, %c0_35, %c0_36] : memref<1x1x1xf32, #tpu.memory_space<vmem>>, vector<1x1x1xf32>
      tpu.vector_store %arg5[%c0_34, %c0_35, %c0_36], %59 {strides = array<i32>} : memref<1x1x1xf32, #tpu.memory_space<vmem>>, vector<1x1x1xf32>,
      %c0_37 = arith.constant 0 : index
      %c0_38 = arith.constant 0 : index
      %c0_39 = arith.constant 0 : index
      %61 = vector.load %arg8[%c0_37, %c0_38, %c0_39] : memref<1x1x1xf32, #tpu.memory_space<vmem>>, vector<1x1x1xf32>
      %c0_40 = arith.constant 0 : index
      %c0_41 = arith.constant 0 : index
      %c0_42 = arith.constant 0 : index
      %62 = vector.load %arg6[%c0_40, %c0_41, %c0_42] : memref<1x1x1xf32, #tpu.memory_space<vmem>>, vector<1x1x1xf32>
      tpu.vector_store %arg6[%c0_40, %c0_41, %c0_42], %61 {strides = array<i32>} : memref<1x1x1xf32, #tpu.memory_space<vmem>>, vector<1x1x1xf32>,
    } else {
    }
    return
  }
  func.func @transform_0(%arg0: i32, %arg1: i32, %arg2: i32) -> (i32, i32, i32) {
    %c1_i32 = arith.constant 1 : i32
    %0 = arith.muli %arg1, %c1_i32 : i32
    %1 = arith.addi %0, %arg2 : i32
    %c0_i32 = arith.constant 0 : i32
    %c0_i32_0 = arith.constant 0 : i32
    return %arg0, %c0_i32, %1 : i32, i32, i32
  }
  func.func @transform_1(%arg0: i32, %arg1: i32, %arg2: i32) -> (i32, i32, i32) {
    %c1_i32 = arith.constant 1 : i32
    %0 = arith.muli %arg1, %c1_i32 : i32
    %1 = arith.addi %0, %arg2 : i32
    %c0_i32 = arith.constant 0 : i32
    %c0_i32_0 = arith.constant 0 : i32
    return %arg0, %c0_i32, %1 : i32, i32, i32
  }
  func.func @transform_2(%arg0: i32, %arg1: i32, %arg2: i32) -> (i32, i32, i32) {
    %c1_i32 = arith.constant 1 : i32
    %0 = arith.muli %arg0, %c1_i32 : i32
    %1 = arith.addi %0, %arg1 : i32
    %c0_i32 = arith.constant 0 : i32
    %c0_i32_0 = arith.constant 0 : i32
    %c0_i32_1 = arith.constant 0 : i32
    return %1, %c0_i32, %c0_i32_0 : i32, i32, i32
  }
  func.func @transform_3(%arg0: i32, %arg1: i32, %arg2: i32) -> (i32, i32, i32) {
    %c1_i32 = arith.constant 1 : i32
    %0 = arith.muli %arg0, %c1_i32 : i32
    %1 = arith.addi %0, %arg1 : i32
    %c0_i32 = arith.constant 0 : i32
    %c0_i32_0 = arith.constant 0 : i32
    %c0_i32_1 = arith.constant 0 : i32
    return %1, %c0_i32, %c0_i32_0 : i32, i32, i32
  }
}

</mosaic_0001>

<bundles_post_ra>
// kernel: tpu_custom_call.1
= control target key start
LH: loop header
LB: loop body
LE: loop exit
PB: predicated region body
PF: predicated region fallthrough
CT: control target
= control target key end

     0   :  { %9 = vsyncpa [#allocation5], 0  ;;  %s1206_s0 = inlined_call_operand.hbm [shape: f32[2,4,256], index: 0, kind: input, shape index: {}]   ;;  %s1207_s1 = inlined_call_operand.hbm [shape: s32[2,1,256], index: 1, kind: input, shape index: {}]   ;;  %s1208_s2 = inlined_call_operand.hbm [shape: f32[2,1,1], index: 2, kind: output, shape index: {0}]   ;;  %s1209_s3 = inlined_call_operand.hbm [shape: f32[2,1,1], index: 3, kind: output, shape index: {1}]  }
   0x1   :  { %11 = vsyncpa [#allocation5 + $0x1], 0 }
   0x2   :  { %12 = vsyncpa [#allocation8], 0 }
   0x3   :  { %14 = vsyncpa [#allocation8 + $0x1], 0 }
   0x4   :  { %15 = vsyncpa [#allocation6], 0 }
   0x5   :  { %17 = vsyncpa [#allocation6 + $0x1], 0 }
   0x6   :  { %18 = vsyncpa [#allocation11], 0 }
   0x7   :  { %20 = vsyncpa [#allocation11 + $0x1], 0  ;;  %s933_s12 = smov 0   ;;  %s935_s13 = smov 0  }
   0x8   :  { %s937_s14 = smov 0   ;;  %s939_s15 = smov 0  }
   0x9   :  { %s941_s16 = smov 0   ;;  %s943_s17 = smov 0  }
   0xa LB: > { %s626_s18 = sadd.s32 4294967295, %s905_s17   ;;  %s627_s19 = sadd.s32 4294967294, %s905_s17   ;;  %s905_s17 = sphi %s943_s17, %s26_s17   ;;  %s901_s16 = sphi %s941_s16, %s1229_s16   ;;  %s897_s15 = sphi %s939_s15, %s1228_s15   ;;  %s893_s14 = sphi %s937_s14, %s1227_s14   ;;  %s889_s13 = sphi %s935_s13, %s1226_s13   ;;  %s885_s12 = sphi %s933_s12, %s1225_s12  }
   0xb   : > { %s45_s20 = sadd.s32 1, %s901_s16  ;;  %s56_s21 = sadd.s32 1, %s893_s14 }
   0xc   : > { %p47_p0 = scmp.ge.s32.totalorder %s45_s20, 2  ;;  %p63_p1 = scmp.ne.s32.totalorder %s893_s14, %s889_s13 }
   0xd   : > { %p64_p2 = scmp.eq.s32.totalorder %s905_s17, 0  ;;  %p69_p3 = scmp.ne.s32.totalorder %s889_s13, %s885_s12 }
   0xe   : > { %s1231_s20 = smov (%p47_p0, %s45_s20), 0  ;;  %p70_p5 = scmp.eq.s32.totalorder %s626_s18, 0 }
   0xf   : > { %p974_p4 = por %p64_p2, %p63_p1  ;;  %s51_s23 = ssub.s32 %s901_s16, %s1231_s20 }
  0x10   : > { %p125_p6 = scmp.eq.s32.totalorder %s626_s18, 1  ;;  %p54_p7 = scmp.eq.s32.totalorder %s51_s23, 0 }
  0x11   : > { %p980_p8 = por %p70_p5, %p69_p3  ;;  %p131_p10 = scmp.eq.s32.totalorder %s627_s19, 1 }
  0x12   : > { %p984_p9 = por %p125_p6, %p63_p1  ;;  %p668_p13 = scmp.lt.s32.totalorder %s905_s17, 2 }
  0x13   : > { %s1213_s24 = scalar_select %p980_p8, 1, 0 }
  0x14   : > { %s1214_s25 = scalar_select %p984_p9, 1, 0 }
  0x15   : > { %s989_s26 = scalar_select %p54_p7, %s893_s14, %s56_s21  }
  0x16   : > { %p991_p11 = por %p131_p10, %p69_p3  ;;  %s998_s28 = sand.u32 1, %s893_s14  }
  0x17   : > { %s630_s29 = sshll.u32 %s998_s28, 3  ;;  %s644_s30 = sshll.u32 %s901_s16, 7 }
  0x18   : > { %s1215_s27 = scalar_select %p991_p11, 1, 0 }
  0x19   : > { %s1005_s6 = scalar_lea.hbm %s1206_s0, %s644_s30  ;;  %s183_s7 = scalar_lea.vmem [#allocation4], %s630_s29 }
  0x1a   : > { %s194_s8 = sshll.u32 %s183_s7, 4  ;;  %p1011_p0 = pnand %p668_p13, %p974_p4  ;;  %s1007_s8 = int_to_ptr.vmem [resolvable:$true] %s194_s8 }
  0x1b   : > { %s180_s10 = scalar_lea.sflag [#allocation5], %s998_s28  ;;  %s727_s11 = scalar_lea.hbm %s1005_s6, 128 }
  0x1c   : > { %p728_p3 = scmp.ne.s32.totalorder %s1005_s6, %s727_s11  ;;  %p729_p5 = pneg %p1011_p0 }
  0x1d   : > { %s732_s21 = scalar_lea.hbm %s1206_s0, 256  ;;  %p733_p4 = scmp.lt.u32.totalorder %s1005_s6, %s1206_s0 }
  0x1e   : > { %p730_p6 = pnand %p729_p5, %p728_p3  ;;  %p734_p10 = scmp.lt.u32.totalorder %s732_s21, %s727_s11 }
  0x1f   : > { %p736_p12 = scmp.lt.u32.totalorder %s727_s11, %s1005_s6 }
  0x20   : > { %p731_p7 = pneg %p730_p6  ;;  %p735_p13 = por %p734_p10, %p733_p4 }
  0x22   : > { %p737_p1 = por %p736_p12, %p735_p13 }
  0x24   : > { %p738_p2 = pnand %p737_p1, %p731_p7 }
  0x26   : > { %741 = shalt.err (!%p738_p2)
}
  0x27   : > { %s742_s29 = scalar_lea.vmem %s1007_s8, 128  ;;  %s907_s30 = smov [#allocation4]  }
  0x28   : > { %p743_p3 = scmp.ne.s32.totalorder %s1007_s8, %s742_s29  ;;  %s747_s4 = sshll.u32 %s907_s30, 4  ;;  %s748_s4 = int_to_ptr.vmem [resolvable:$false] %s747_s4 }
  0x29   : > { %s749_s5 = scalar_lea.vmem %s748_s4, 256  ;;  %p750_p9 = scmp.lt.s32.totalorder %s1007_s8, %s748_s4 }
  0x2a   : > { %p745_p6 = pnand %p743_p3, %p729_p5  ;;  %p751_p4 = scmp.lt.s32.totalorder %s749_s5, %s742_s29 }
  0x2c   : > { %p746_p11 = pneg %p745_p6  ;;  %p752_p10 = por %p751_p4, %p750_p9 }
  0x2e   : > { %p753_p12 = pnand %p752_p10, %p746_p11 }
  0x30   : > { %756 = shalt.err (!%p753_p12)
}
  0x31   : > { %657 = dma.hbm_to_vmem [thread:$0]  (!%p1011_p0), %s1005_s6, 128, %s1007_s8, %s180_s10  }
  0x32   : > { %p1217_p1 = scmp.lt.s32.totalorder %s905_s17, 3  ;;  %p1218_p2 = scmp.ge.s32.totalorder %s905_s17, 1 }
  0x33   : > { %s633_s11 = sshll.u32 %s998_s28, 1  ;;  %s645_s18 = sshll.u32 %s901_s16, 5 }
  0x34   : > { %p1047_p7 = pnand %p1218_p2, %p1217_p1  ;;  %s1056_s22 = scalar_lea.hbm %s1207_s1, %s645_s18 }
  0x35   : > { %s205_s23 = scalar_lea.vmem [#allocation7], %s633_s11  ;;  %s202_s6 = scalar_lea.sflag [#allocation8], %s998_s28 }
  0x36   : > { %s1219_s7 = scalar_select %p1047_p7, 1, 0 }
  0x37   : > { %s216_s29 = sshll.u32 %s205_s23, 4  ;;  %s757_s8 = scalar_lea.hbm %s1056_s22, 32  ;;  %s217_s29 = int_to_ptr.vmem [resolvable:$true] %s216_s29 }
  0x38   : > { %p758_p9 = scmp.ne.s32.totalorder %s1056_s22, %s757_s8  ;;  %s762_s4 = scalar_lea.hbm %s1207_s1, 64 }
  0x39   : > { %p763_p3 = scmp.lt.u32.totalorder %s1056_s22, %s1207_s1  ;;  %p764_p6 = scmp.lt.u32.totalorder %s762_s4, %s757_s8 }
  0x3a   : > { %p760_p11 = pnand %p758_p9, %p729_p5  ;;  %p766_p10 = scmp.lt.u32.totalorder %s757_s8, %s1056_s22 }
  0x3b   : > { %p765_p4 = por %p764_p6, %p763_p3 }
  0x3c   : > { %p761_p13 = pneg %p760_p11 }
  0x3d   : > { %p767_p12 = por %p766_p10, %p765_p4 }
  0x3f   : > { %p768_p1 = pnand %p767_p12, %p761_p13 }
  0x41   : > { %771 = shalt.err (!%p768_p1)
}
  0x42   : > { %s772_s28 = scalar_lea.vmem %s217_s29, 32  ;;  %s908_s11 = smov [#allocation7]  }
  0x43   : > { %p773_p2 = scmp.ne.s32.totalorder %s217_s29, %s772_s28  ;;  %s777_s19 = sshll.u32 %s908_s11, 4  ;;  %s778_s19 = int_to_ptr.vmem [resolvable:$false] %s777_s19 }
  0x44   : > { %s779_s21 = scalar_lea.vmem %s778_s19, 64  ;;  %p780_p8 = scmp.lt.s32.totalorder %s217_s29, %s778_s19 }
  0x45   : > { %p775_p9 = pnand %p773_p2, %p729_p5  ;;  %p781_p7 = scmp.lt.s32.totalorder %s779_s21, %s772_s28 }
  0x47   : > { %p776_p11 = pneg %p775_p9  ;;  %p782_p3 = por %p781_p7, %p780_p8 }
  0x49   : > { %p783_p6 = pnand %p782_p3, %p776_p11 }
  0x4b   : > { %786 = shalt.err (!%p783_p6)
}
  0x4c   : > { %660 = dma.hbm_to_vmem [thread:$0]  (!%p1011_p0), %s1056_s22, 32, %s217_s29, %s202_s6  }
  0x4d   : > { %p1220_p13 = scmp.ne.s32.totalorder %s1219_s7, 0 }
  0x4e   : > { %s1081_s23 = sand.u32 (!%p1220_p13), 1, %s889_s13   ;;  %p1221_p5 = scmp.ne.s32.totalorder (!%p1220_p13), %s1213_s24, 0 }
  0x4f   : > { %225 = sbr.rel (%p1220_p13) target bundleno = 356 (0x164), region = 28  ;;  %s637_s8 = sshll.u32 (!%p1220_p13), %s1081_s23, 3 }
  0x50   : > { %s228_s10 = scalar_lea.sflag (!%p1220_p13), [#allocation5], %s1081_s23  ;;  %s231_s30 = scalar_lea.vmem (!%p1220_p13), [#allocation4], %s637_s8 }
  0x56   : > { %868 = dma.done.wait (%p1221_p5), %s228_s10, 128  }
  0x57   : > { %870 = vsyncadd (%p1221_p5), %s228_s10, 4294967168  ;;  %s638_s9 = sshll.u32 %s1081_s23, 1  ;;  %s237_s7 = scalar_lea.sflag [#allocation8], %s1081_s23 }
  0x58   : > { %s1091_s22 = scalar_lea.vmem [#allocation7], %s638_s9 }
  0x59   : > { %872 = dma.done.wait (%p1221_p5), %s237_s7, 32  }
  0x5a   : > { %874 = vsyncadd (%p1221_p5), %s237_s7, 4294967264  ;;  %vm281_vm0 = vcmask 0   ;;  %v909_v0 = vmov 0.0   ;;  %vm290_vm1 = vcmask 1043456   ;;  %v284_v1 = vld [vmem:[%s231_s30] sm:$0xff]  ;;  %v339_v21 = vlaneseq  ;;  %s640_s24 = sshll.u32 %s897_s15, 4 }
  0x5b   : > { %282 = vst.msk [vmem:[#allocation2] sm:$0x1] %vm281_vm0, %v909_v0  ;;  %283 = vst.msk [vmem:[#allocation3] sm:$0x1] %vm281_vm0, %v909_v0  ;;  %v288_v2 = vcombine.high %v284_v1, %v284_v1  ;;  %v291_v3 = vsel %vm290_vm1, %v284_v1, -inf  ;;  %vm419_vm7 = vcmask 1040384   ;;  %s1116_s18 = scalar_lea.hbm %s1208_s2, %s640_s24 }
  0x5c   : > { %v292_v4 = vrot.slane %v291_v3, 4  ;;  %v910_v19 = vmov 1966171168   ;;  %v340_v24 = vshrl.u32 %v339_v21, 7  ;;  %v285_v32 = vld [vmem:[%s1091_s22] sm:$0x3] }
  0x5d   : > { %v298_v5 = vsel %vm290_vm1, %v288_v2, -inf  ;;  %v337_v20 = vunpack.c.l.s4 %v910_v19  ;;  %vm335_vm2 = vcmp.eq.s32.totalorder %v285_v32, 0  ;;  %vm353_vm3 = vcmp.eq.s32.totalorder %v285_v32, 1  ;;  %s264_s29 = scalar_lea.vmem [#allocation9], %s1081_s23  ;;  %s270_s28 = scalar_lea.vmem [#allocation10], %s1081_s23 }
  0x5e   : > { %v293_v6 = vmax.f32 %v291_v3, %v292_v4  ;;  %v299_v7 = vrot.slane %v298_v5, 4  ;;  %vm365_vm4 = vcmp.eq.s32.totalorder %v285_v32, 2  ;;  %vm370_vm5 = vcmp.eq.s32.totalorder %v285_v32, 3  ;;  %s474_s6 = sshll.u32 %s264_s29, 4  ;;  %s1123_s11 = sshll.u32 %s270_s28, 4  ;;  %s1118_s6 = int_to_ptr.vmem [resolvable:$true] %s474_s6  ;;  %s1156_s11 = int_to_ptr.vmem [resolvable:$true] %s1123_s11 }
  0x5f   : > { %v338_v23 = vunpack.c.0.s8 %v337_v20  ;;  %v378_v56 = vsub.s32 0, %v340_v24  ;;  %v382_v57 = vsub.s32 1, %v340_v24  ;;  %vm286_vm6 = vcmp.ne.s32.totalorder %v285_v32, 0  ;;  %s457_s19 = scalar_lea.sflag [#allocation6], %s1081_s23  ;;  %s787_s21 = scalar_lea.vmem %s1118_s6, 16 }
  0x60   : > { %v294_v8 = vrot.slane %v293_v6, 2  ;;  %v300_v9 = vmax.f32 %v298_v5, %v299_v7  ;;  %v639_v7 = vsel %vm286_vm6, 1.0, %v909_v0  ;;  %p788_p8 = scmp.ne.s32.totalorder %s1118_s6, %s787_s21  ;;  %p1222_p0 = scmp.ne.s32.totalorder %s1214_s25, 0 }
  0x61   : > { %v341_v25 = vsub.s32 %v338_v23, %v340_v24  ;;  %s911_s8 = smov [#allocation9]  }
  0x62   : > { %v295_v10 = vmax.f32 %v293_v6, %v294_v8  ;;  %v301_v11 = vrot.slane %v300_v9, 2  ;;  %v407_v0 = vld [vmem:[#allocation2] sm:$0x1]  ;;  %p789_p7 = pnand %p788_p8, %p1222_p0  ;;  %s791_s10 = sshll.u32 %s911_s8, 4  ;;  %s792_s10 = int_to_ptr.vmem [resolvable:$false] %s791_s10 }
  0x63   : > { %v342_v26 = vrot.slane %v284_v1, %v341_v25  ;;  %s793_s30 = scalar_lea.vmem %s792_s10, 32  ;;  %p794_p10 = scmp.lt.s32.totalorder %s1118_s6, %s792_s10 }
  0x64   : > { %v296_v12 = vrot.slane %v295_v10, 1  ;;  %v302_v13 = vmax.f32 %v300_v9, %v301_v11  ;;  %v435_v9 = vrot.slane %v639_v7, %v378_v56  ;;  %p790_p4 = pneg %p789_p7  ;;  %p795_p12 = scmp.lt.s32.totalorder %s793_s30, %s787_s21 }
  0x65   : > { %v354_v31 = vcombine.high %v342_v26, %v342_v26  ;;  %v349_v36 = vrot.slane %v342_v26, %v341_v25 }
  0x66   : > { %v297_v14 = vmax.f32 %v295_v10, %v296_v12  ;;  %v303_v15 = vrot.slane %v302_v13, 1  ;;  %v439_v10 = vrot.slane %v639_v7, %v382_v57  ;;  %p796_p1 = por %p795_p12, %p794_p10 }
  0x67   : > { %v361_v39 = vrot.slane %v354_v31, %v341_v25  ;;  %v351_v42 = vsel %vm335_vm2, %v349_v36, 0.0  ;;  %v366_v46 = vcombine.high %v349_v36, %v349_v36 }
  0x68   : > { %v304_v16 = vmax.f32 %v302_v13, %v303_v15  ;;  %p797_p2 = pnand %p796_p1, %p790_p4 }
  0x69   : > { %v363_v45 = vsel %vm353_vm3, %v361_v39, 0.0  ;;  %v368_v51 = vsel %vm365_vm4, %v366_v46, 0.0  ;;  %v371_v52 = vcombine.high %v361_v39, %v361_v39 }
  0x6a   : > { %v307_v17 = vcombine.low %v297_v14, %v304_v16  ;;  %v364_v49 = vadd.f32 %v363_v45, %v351_v42 }
  0x6b   : > { %v373_v54 = vsel %vm370_vm5, %v371_v52, 0.0 }
  0x6c   : > { %v309_v18 = vsub.f32 %v284_v1, %v307_v17  ;;  %v369_v53 = vadd.f32 %v368_v51, %v364_v49  ;;  %v442_v17 = vsel %vm419_vm7, %v435_v9, 0.0 }
  0x6e   : > { %v310_v22 = vmul.f32 1.442695, %v309_v18  ;;  %v374_v55 = vadd.f32 %v373_v54, %v369_v53 }
  0x70   : > { %721 = vpow2.f32 %v310_v22  ;;  %v379_v60 = vrot.slane %v374_v55, %v378_v56  ;;  %v383_v1 = vrot.slane %v374_v55, %v382_v57  ;;  %v428_v22 = vld [vmem:[#allocation3] sm:$0x1] }
  0x7a   : > { %v722_v27 = vpop.eup %721 }
  0x7b   : > { %v313_v28 = vcombine.high %v722_v27, %v722_v27  ;;  %v315_v29 = vsel %vm290_vm1, %v722_v27, 0.0 }
  0x7c   : > { %v316_v30 = vrot.slane %v315_v29, 4 }
  0x7d   : > { %v322_v33 = vsel %vm290_vm1, %v313_v28, 0.0 }
  0x7e   : > { %v317_v34 = vadd.f32 %v316_v30, %v315_v29  ;;  %v323_v35 = vrot.slane %v322_v33, 4 }
  0x80   : > { %v318_v37 = vrot.slane %v317_v34, 2  ;;  %v324_v38 = vadd.f32 %v323_v35, %v322_v33 }
  0x82   : > { %v319_v40 = vadd.f32 %v318_v37, %v317_v34  ;;  %v325_v41 = vrot.slane %v324_v38, 2 }
  0x84   : > { %v320_v43 = vrot.slane %v319_v40, 1  ;;  %v326_v44 = vadd.f32 %v325_v41, %v324_v38 }
  0x86   : > { %v321_v47 = vadd.f32 %v320_v43, %v319_v40  ;;  %v327_v48 = vrot.slane %v326_v44, 1 }
  0x88   : > { %v328_v50 = vadd.f32 %v327_v48, %v326_v44  ;;  %723 = vlog2.f32 %v321_v47 }
  0x8a   : > { %725 = vlog2.f32 %v328_v50 }
  0x92   : > { %v724_v58 = vpop.eup %723 }
  0x93   : > { %v330_v59 = vmul.f32 0.6931472, %v724_v58 }
  0x94   : > { %v726_v61 = vpop.eup %725 }
  0x95   : > { %v332_v62 = vmul.f32 0.6931472, %v726_v61  ;;  %v333_v63 = vadd.f32 %v330_v59, %v297_v14 }
  0x97   : > { %v334_v2 = vadd.f32 %v332_v62, %v304_v16  ;;  %v386_v3 = vsub.f32 %v333_v63, %v379_v60  ;;  %v443_v16 = vsel %vm419_vm7, %v439_v10, 0.0 }
  0x98   : > { %v444_v19 = vadd.f32 %v443_v16, %v442_v17 }
  0x99   : > { %v387_v4 = vsub.f32 %v334_v2, %v383_v1 }
  0x9b   : > { %v390_v5 = vcombine.low %v386_v3, %v387_v4 }
  0x9d   : > { %v397_v6 = vrot.slane %v390_v5, %v341_v25 }
  0x9f   : > { %v404_v8 = vrot.slane %v397_v6, %v341_v25 }
  0xa1   : > { %v406_v11 = vsel %vm286_vm6, %v404_v8, 0.0 }
  0xa2   : > { %v412_v12 = vrot.slane %v406_v11, %v378_v56  ;;  %v416_v13 = vrot.slane %v406_v11, %v382_v57 }
  0xa4   : > { %v420_v15 = vsel %vm419_vm7, %v412_v12, 0.0  ;;  %v421_v14 = vsel %vm419_vm7, %v416_v13, 0.0 }
  0xa5   : > { %v422_v18 = vadd.f32 %v421_v14, %v420_v15 }
  0xa7   : > { %423 = vadd.xlane.f32.xlu0 %v422_v18 }
  0xab   : > { %445 = vadd.xlane.f32.xlu0 %v444_v19 }
 0x134   : > { %v424_v20 = vpop.xlane.xlu0 %423 }
 0x135   : > { %v425_v21 = vadd.f32 %v424_v20, %v407_v0 }
 0x137   : > { %427 = vst.msk [vmem:[#allocation2] sm:$0x1] %vm281_vm0, %v425_v21 }
 0x138   : > { %v446_v23 = vpop.xlane.xlu0 %445 }
 0x139   : > { %v447_v24 = vadd.f32 %v446_v23, %v428_v22 }
 0x13b   : > { %448 = vst.msk [vmem:[#allocation3] sm:$0x1] %vm281_vm0, %v447_v24 }
 0x13e   : > { %v452_v25 = vld [vmem:[#allocation2] sm:$0x1] }
 0x13f   : > { %453 = vst.msk [vmem:[%s264_s29] sm:$0x1] %vm281_vm0, %v452_v25 }
 0x140   : > { %800 = shalt.err (!%p797_p2)
}
 0x141   : > { %s801_s9 = scalar_lea.hbm %s1116_s18, 16  ;;  %s805_s29 = scalar_lea.hbm %s1208_s2, 32 }
 0x142   : > { %p802_p9 = scmp.ne.s32.totalorder %s1116_s18, %s801_s9  ;;  %p806_p6 = scmp.lt.u32.totalorder %s1116_s18, %s1208_s2 }
 0x143   : > { %p807_p13 = scmp.lt.u32.totalorder %s805_s29, %s801_s9  ;;  %p809_p8 = scmp.lt.u32.totalorder %s801_s9, %s1116_s18 }
 0x144   : > { %p803_p11 = pnand %p802_p9, %p1222_p0 }
 0x145   : > { %p808_p5 = por %p807_p13, %p806_p6 }
 0x146   : > { %p804_p3 = pneg %p803_p11 }
 0x147   : > { %p810_p7 = por %p809_p8, %p808_p5 }
 0x149   : > { %p811_p4 = pnand %p810_p7, %p804_p3 }
 0x14b   : > { %814 = shalt.err (!%p811_p4)
}
 0x14c   : > { %650 = dma.vmem_to_hbm [thread:$0]  (%p1222_p0), %s1118_s6, 16, %s1116_s18, %s457_s19   ;;  %v454_v26 = vld [vmem:[#allocation3] sm:$0x1] }
 0x14d   : > { %s1153_s10 = scalar_lea.hbm %s1209_s3, %s640_s24  ;;  %455 = vst.msk [vmem:[%s270_s28] sm:$0x1] %vm281_vm0, %v454_v26  ;;  %s461_s30 = scalar_lea.sflag [#allocation11], %s1081_s23 }
 0x14e   : > { %s815_s9 = scalar_lea.vmem %s1156_s11, 16  ;;  %s912_s15 = smov [#allocation10]  }
 0x14f   : > { %p816_p10 = scmp.ne.s32.totalorder %s1156_s11, %s815_s9  ;;  %s819_s6 = sshll.u32 %s912_s15, 4  ;;  %s820_s6 = int_to_ptr.vmem [resolvable:$false] %s819_s6 }
 0x150   : > { %s821_s24 = scalar_lea.vmem %s820_s6, 32  ;;  %p822_p2 = scmp.lt.s32.totalorder %s1156_s11, %s820_s6 }
 0x151   : > { %p817_p12 = pnand %p816_p10, %p1222_p0  ;;  %p823_p9 = scmp.lt.s32.totalorder %s821_s24, %s815_s9 }
 0x153   : > { %p818_p1 = pneg %p817_p12  ;;  %p824_p11 = por %p823_p9, %p822_p2 }
 0x155   : > { %p825_p3 = pnand %p824_p11, %p818_p1 }
 0x157   : > { %828 = shalt.err (!%p825_p3)
}
 0x158   : > { %s829_s23 = scalar_lea.hbm %s1153_s10, 16  ;;  %s833_s19 = scalar_lea.hbm %s1209_s3, 32 }
 0x159   : > { %p830_p6 = scmp.ne.s32.totalorder %s1153_s10, %s829_s23  ;;  %p834_p8 = scmp.lt.u32.totalorder %s1153_s10, %s1209_s3 }
 0x15a   : > { %p835_p7 = scmp.lt.u32.totalorder %s833_s19, %s829_s23  ;;  %p837_p10 = scmp.lt.u32.totalorder %s829_s23, %s1153_s10 }
 0x15b   : > { %p831_p13 = pnand %p830_p6, %p1222_p0 }
 0x15c   : > { %p836_p4 = por %p835_p7, %p834_p8 }
 0x15d   : > { %p832_p5 = pneg %p831_p13 }
 0x15e   : > { %p838_p12 = por %p837_p10, %p836_p4 }
 0x160   : > { %p839_p1 = pnand %p838_p12, %p832_p5 }
 0x162   : > { %842 = shalt.err (!%p839_p1)
}
 0x163   : > { %651 = dma.vmem_to_hbm [thread:$0]  (%p1222_p0), %s1156_s11, 16, %s1153_s10, %s461_s30  }
 0x164 PF: > { %s500_s29 = sand.u32 1, %s885_s12   ;;  %p1223_p2 = scmp.ne.s32.totalorder %s1215_s27, 0 }
 0x165   : > { %p1224_p9 = scmp.ge.s32.totalorder %s905_s17, 2  ;;  %s501_s4 = scalar_lea.sflag [#allocation6], %s500_s29 }
 0x167   : > { %p662_p11 = pnand %p1224_p9, %p1223_p2 }
 0x169   : > { %876 = dma.done.wait (!%p662_p11), %s501_s4, 16  }
 0x16a   : > { %878 = vsyncadd (!%p662_p11), %s501_s4, 4294967280  ;;  %s509_s5 = scalar_lea.sflag [#allocation11], %s500_s29 }
 0x16b   : > { %880 = dma.done.wait (!%p662_p11), %s509_s5, 16  }
 0x16c   : > { %882 = vsyncadd (!%p662_p11), %s509_s5, 4294967280  ;;  %s26_s17 = sadd.s32 1, %s905_s17   ;;  %s1225_s12 = smov %s889_s13 }
 0x16d   : > { %p23_p3 = scmp.ge.s32.totalorder %s26_s17, 4   ;;  %s1226_s13 = smov %s893_s14 }
 0x16e   : > { %s1227_s14 = smov %s989_s26  ;;  %s1228_s15 = smov %s901_s16 }
 0x16f   : > { %s1229_s16 = smov %s1231_s20  ;;  %25 = sbr.rel (!%p23_p3) target bundleno = 10 (0xa), region = 111 }
 0x176   :  { %513 = vsyncpa [#allocation5], 1 }
 0x177   :  { %515 = vsyncpa [#allocation5 + $0x1], 1 }
 0x178   :  { %516 = vsyncpa [#allocation8], 1 }
 0x179   :  { %518 = vsyncpa [#allocation8 + $0x1], 1 }
 0x17a   :  { %519 = vsyncpa [#allocation6], 1 }
 0x17b   :  { %521 = vsyncpa [#allocation6 + $0x1], 1 }
 0x17c   :  { %522 = vsyncpa [#allocation11], 1 }
 0x17d   :  { %524 = vsyncpa [#allocation11 + $0x1], 1 }

</bundles_post_ra>
